<compile_context>
chip_gen: v7x
topology: tpu7x:2x2x1
jax: 0.10.0
libtpu: 0.0.40
codegen_flags: <defaults>
</compile_context>

<pallas_src>
import functools

import jax
import jax.numpy as jnp
from jax import lax
from jax.experimental import pallas as pl
from jax.experimental.pallas import tpu as pltpu

LANE = 128  # lane width of the padded, lane-dense output slab


def _round_up(x, m):
    return ((x + m - 1) // m) * m


def ppo_fused_kernel(x_ref, w1_ref, b1_ref, w2_ref, b2_ref, wh_ref, bh_ref,
                     out_ref, *, num_actions):
    x = x_ref[...]                                               # (tm, obs_dim)

    # fc_layers: Linear -> ReLU -> Linear -> ReLU   (MXU matmuls + VPU max)
    h1 = jnp.dot(x, w1_ref[...], preferred_element_type=jnp.float32) + b1_ref[...]
    h1 = jnp.maximum(h1, 0.0)
    h2 = jnp.dot(h1, w2_ref[...], preferred_element_type=jnp.float32) + b2_ref[...]
    h2 = jnp.maximum(h2, 0.0)

    # Fused head: one matmul gives [fc_pi logits | fc_v value | zero padding] -> (tm, 128)
    y = jnp.dot(h2, wh_ref[...], preferred_element_type=jnp.float32) + bh_ref[...]

    lane = lax.broadcasted_iota(jnp.int32, y.shape, 1)
    is_action = lane < num_actions

    # Numerically-stable softmax over the action lanes only.
    m = jnp.max(jnp.where(is_action, y, -jnp.inf), axis=1, keepdims=True)
    # Clamp the exp argument so the discarded value/padding lanes cannot overflow;
    # on the action lanes y - m <= 0 already, so the clamp is exact there.
    e = jnp.where(is_action, jnp.exp(jnp.minimum(y - m, 0.0)), 0.0)
    denom = jnp.sum(e, axis=1, keepdims=True)
    prob = e / denom            # exact division: rows must sum to 1 for downstream log-probs

    # Lane-dense padded output slab: prob in lanes [0, A), value in lane A, zeros after.
    value_lane = jnp.where(lane == num_actions, y, 0.0)
    out_ref[...] = (prob + value_lane).astype(out_ref.dtype)


def pack_params(params):
    """(w1,b1,w2,b2,wpi,bpi,wv,bv) -> kernel-ready params with a fused, lane-padded head."""
    w1, b1, w2, b2, wpi, bpi, wv, bv = params
    hidden = w1.shape[1]
    num_actions = wpi.shape[1]
    assert num_actions + 1 <= LANE, "fused head requires num_actions + 1 <= 128"
    wh = jnp.zeros((hidden, LANE), jnp.float32)
    wh = wh.at[:, :num_actions].set(wpi).at[:, num_actions:num_actions + 1].set(wv)
    bh = jnp.zeros((1, LANE), jnp.float32)
    bh = bh.at[:, :num_actions].set(bpi).at[:, num_actions:num_actions + 1].set(bv)
    return (w1, b1, w2, b2, wh, bh, num_actions)


def ppo_forward_batch(obs_batch, packed_params, *, m_tile=1024, out_dtype=jnp.bfloat16):
    """obs_batch: (B, obs_dim) float32.  Returns (prob (B, A), value (B, 1)) as float32."""
    w1, b1, w2, b2, wh, bh, num_actions = packed_params
    B, obs_dim = obs_batch.shape
    hidden = w1.shape[1]

    out_itemsize = jnp.dtype(out_dtype).itemsize
    row_align = 16 if out_itemsize < 4 else 8      # sublane tile: bf16 packs 16 rows/vreg
    Bp = _round_up(B, row_align)                   # pad only to the row alignment, NOT to tm

    # Batch tile: big tiles amortize the ~0.35us per-grid-step overhead; Pallas handles a
    # ragged last block (grid = cdiv).  Force >= 2 grid steps when possible so the
    # "parallel" axis shards across both TensorCores on v7x.
    tm = min(_round_up(m_tile, row_align), Bp)
    if pl.cdiv(Bp, tm) == 1 and Bp >= 2 * row_align:
        tm = _round_up(pl.cdiv(Bp, 2), row_align)
    grid = pl.cdiv(Bp, tm)

    x = obs_batch.astype(jnp.float32)
    if Bp != B:
        x = jnp.pad(x, ((0, Bp - B), (0, 0)))

    flops = 2 * Bp * (obs_dim * hidden + hidden * hidden + hidden * LANE)
    bytes_accessed = (4 * (Bp * obs_dim
                           + w1.size + b1.size + w2.size + b2.size + wh.size + bh.size)
                      + Bp * LANE * out_itemsize)
    cost = pl.CostEstimate(flops=int(flops),
                           transcendentals=int(Bp * num_actions),
                           bytes_accessed=int(bytes_accessed))

    kernel = functools.partial(ppo_fused_kernel, num_actions=num_actions)

    out = pl.pallas_call(
        kernel,
        out_shape=jax.ShapeDtypeStruct((Bp, LANE), out_dtype),
        grid=(grid,),
        in_specs=[
            pl.BlockSpec((tm, obs_dim), lambda i: (i, 0)),       # x tile (varies with i)
            pl.BlockSpec((obs_dim, hidden), lambda i: (0, 0)),   # weights: VMEM-resident
            pl.BlockSpec((1, hidden), lambda i: (0, 0)),
            pl.BlockSpec((hidden, hidden), lambda i: (0, 0)),
            pl.BlockSpec((1, hidden), lambda i: (0, 0)),
            pl.BlockSpec((hidden, LANE), lambda i: (0, 0)),
            pl.BlockSpec((1, LANE), lambda i: (0, 0)),
        ],
        out_specs=pl.BlockSpec((tm, LANE), lambda i: (i, 0)),
        compiler_params=pltpu.CompilerParams(dimension_semantics=("parallel",)),
        cost_estimate=cost,
    )(x, w1, b1, w2, b2, wh, bh)

    prob = out[:B, :num_actions].astype(jnp.float32)
    value = out[:B, num_actions:num_actions + 1].astype(jnp.float32)
    return prob, value


def ppo_forward(obs, packed_params, **kwargs):
    """Single-observation path matching the PyTorch module's `_format` unsqueeze(0)."""
    return ppo_forward_batch(obs.astype(jnp.float32)[None, :], packed_params, **kwargs)


def ppo_forward_ref(x, params):
    """Pure-JAX reference for correctness checking."""
    w1, b1, w2, b2, wpi, bpi, wv, bv = params
    h = jnp.maximum(x @ w1 + b1, 0.0)
    h = jnp.maximum(h @ w2 + b2, 0.0)
    prob = jax.nn.softmax(h @ wpi + bpi, axis=1)
    value = h @ wv + bv
    return prob, value


def init_params(key, obs_dim, hidden_dim, num_actions):
    """Deterministic synthetic weights (PyTorch-style uniform fan-in init).
    Stored transposed: (in_features, out_features); biases as (1, out_features)."""
    ks = jax.random.split(key, 8)

    def lin(kw, kb, fan_in, fan_out):
        bound = 1.0 / jnp.sqrt(fan_in)
        w = jax.random.uniform(kw, (fan_in, fan_out), jnp.float32, -bound, bound)
        b = jax.random.uniform(kb, (1, fan_out), jnp.float32, -bound, bound)
        return w, b

    w1, b1 = lin(ks[0], ks[1], obs_dim, hidden_dim)
    w2, b2 = lin(ks[2], ks[3], hidden_dim, hidden_dim)
    wpi, bpi = lin(ks[4], ks[5], hidden_dim, num_actions)
    wv, bv = lin(ks[6], ks[7], hidden_dim, 1)
    return (w1, b1, w2, b2, wpi, bpi, wv, bv)


if __name__ == "__main__":
    OBS_DIM, HIDDEN_DIM, NUM_ACTIONS, BATCH = 16, 32, 8, 64

    key = jax.random.PRNGKey(0)
    k_obs, k_par = jax.random.split(key)
    obs_batch = jax.random.normal(k_obs, (BATCH, OBS_DIM), dtype=jnp.float32)
    params = init_params(k_par, OBS_DIM, HIDDEN_DIM, NUM_ACTIONS)
    packed = pack_params(params)

    ref_prob, ref_value = ppo_forward_ref(obs_batch, params)

    # 1) Default (bf16 output slab) path -- halves the dominant HBM writeback.
    prob, value = ppo_forward_batch(obs_batch, packed)
    jax.block_until_ready((prob, value))
    assert prob.shape == (BATCH, NUM_ACTIONS) and value.shape == (BATCH, 1)
    assert float(jnp.max(jnp.abs(prob - ref_prob))) < 1e-2
    assert float(jnp.max(jnp.abs(value - ref_value))) < 1e-2
    assert float(jnp.max(jnp.abs(jnp.sum(prob, axis=1) - 1.0))) < 1e-2

    # 2) Exact f32 output path (tight tolerances; softmax now uses exact division).
    prob32, value32 = ppo_forward_batch(obs_batch, packed, out_dtype=jnp.float32)
    jax.block_until_ready((prob32, value32))
    assert float(jnp.max(jnp.abs(prob32 - ref_prob))) < 1e-4
    assert float(jnp.max(jnp.abs(value32 - ref_value))) < 1e-4
    assert float(jnp.max(jnp.abs(jnp.sum(prob32, axis=1) - 1.0))) < 1e-5

    # 3) Ragged last block (B not a multiple of the tile) -- pads only to the row
    #    alignment, grid = cdiv, last block is partially out of bounds.
    B2 = 100
    obs2 = jax.random.normal(jax.random.PRNGKey(1), (B2, OBS_DIM), dtype=jnp.float32)
    p2, v2 = ppo_forward_batch(obs2, packed)
    jax.block_until_ready((p2, v2))
    rp2, rv2 = ppo_forward_ref(obs2, params)
    assert p2.shape == (B2, NUM_ACTIONS) and v2.shape == (B2, 1)
    assert float(jnp.max(jnp.abs(p2 - rp2))) < 1e-2
    assert float(jnp.max(jnp.abs(v2 - rv2))) < 1e-2

    # 4) Single-observation path (the PyTorch module's actual call signature).
    p1, v1 = ppo_forward(obs_batch[0], packed)
    jax.block_until_ready((p1, v1))
    assert p1.shape == (1, NUM_ACTIONS) and v1.shape == (1, 1)
    assert float(jnp.max(jnp.abs(p1 - ref_prob[:1]))) < 1e-2
    assert float(jnp.max(jnp.abs(v1 - ref_value[:1]))) < 1e-2

    print("KERNEL_OK")
</pallas_src>

<mosaic_0001>
module attributes {stable_mosaic.version = 11 : i64} {
  func.func @ppo_fused_kernel(%arg0: i32, %arg1: memref<32x16xf32, #tpu.memory_space<vmem>>, %arg2: memref<16x32xf32, #tpu.memory_space<vmem>>, %arg3: memref<1x32xf32, #tpu.memory_space<vmem>>, %arg4: memref<32x32xf32, #tpu.memory_space<vmem>>, %arg5: memref<1x32xf32, #tpu.memory_space<vmem>>, %arg6: memref<32x128xf32, #tpu.memory_space<vmem>>, %arg7: memref<1x128xf32, #tpu.memory_space<vmem>>, %arg8: memref<32x128xbf16, #tpu.memory_space<vmem>>) attributes {dimension_semantics = [#tpu.dimension_semantics<parallel>], iteration_bounds = array<i64: 2>, scalar_prefetch = 0 : i64, scratch_operands = 0 : i64, tpu.core_type = #tpu.core_type<tc>, window_params = [{transform_indices = @transform_0, window_bounds = array<i64: 32, 16>}, {pipeline_mode = #tpu.pipeline_mode<synchronous>, transform_indices = @transform_1, window_bounds = array<i64: 16, 32>}, {pipeline_mode = #tpu.pipeline_mode<synchronous>, transform_indices = @transform_2, window_bounds = array<i64: 1, 32>}, {pipeline_mode = #tpu.pipeline_mode<synchronous>, transform_indices = @transform_3, window_bounds = array<i64: 32, 32>}, {pipeline_mode = #tpu.pipeline_mode<synchronous>, transform_indices = @transform_4, window_bounds = array<i64: 1, 32>}, {pipeline_mode = #tpu.pipeline_mode<synchronous>, transform_indices = @transform_5, window_bounds = array<i64: 32, 128>}, {pipeline_mode = #tpu.pipeline_mode<synchronous>, transform_indices = @transform_6, window_bounds = array<i64: 1, 128>}, {transform_indices = @transform_7, window_bounds = array<i64: 32, 128>}]} {
    %c0 = arith.constant 0 : index
    %c0_0 = arith.constant 0 : index
    %0 = vector.load %arg1[%c0, %c0_0] : memref<32x16xf32, #tpu.memory_space<vmem>>, vector<32x16xf32>
    %c0_1 = arith.constant 0 : index
    %c0_2 = arith.constant 0 : index
    %1 = vector.load %arg2[%c0_1, %c0_2] : memref<16x32xf32, #tpu.memory_space<vmem>>, vector<16x32xf32>
    %cst = arith.constant dense<0.000000e+00> : vector<32x32xf32>
    %2 = tpu.matmul %0, %1, %cst {dimension_numbers = #tpu.dot_dimension_numbers<[1], [0], [0], [1], [0, 0, 1, 1], [], []>} : vector<32x16xf32>, vector<16x32xf32>, vector<32x32xf32> -> vector<32x32xf32>
    %c0_3 = arith.constant 0 : index
    %c0_4 = arith.constant 0 : index
    %3 = vector.load %arg3[%c0_3, %c0_4] : memref<1x32xf32, #tpu.memory_space<vmem>>, vector<1x32xf32>
    %4 = vector.broadcast %3 : vector<1x32xf32> to vector<32x32xf32>
    %5 = arith.addf %2, %4 : vector<32x32xf32>
    %cst_5 = arith.constant 0.000000e+00 : f32
    %6 = vector.broadcast %cst_5 : f32 to vector<32x32xf32>
    %7 = arith.maximumf %5, %6 : vector<32x32xf32>
    %c0_6 = arith.constant 0 : index
    %c0_7 = arith.constant 0 : index
    %8 = vector.load %arg4[%c0_6, %c0_7] : memref<32x32xf32, #tpu.memory_space<vmem>>, vector<32x32xf32>
    %cst_8 = arith.constant dense<0.000000e+00> : vector<32x32xf32>
    %9 = tpu.matmul %7, %8, %cst_8 {dimension_numbers = #tpu.dot_dimension_numbers<[1], [0], [0], [1], [0, 0, 1, 1], [], []>} : vector<32x32xf32>, vector<32x32xf32>, vector<32x32xf32> -> vector<32x32xf32>
    %c0_9 = arith.constant 0 : index
    %c0_10 = arith.constant 0 : index
    %10 = vector.load %arg5[%c0_9, %c0_10] : memref<1x32xf32, #tpu.memory_space<vmem>>, vector<1x32xf32>
    %11 = vector.broadcast %10 : vector<1x32xf32> to vector<32x32xf32>
    %12 = arith.addf %9, %11 : vector<32x32xf32>
    %cst_11 = arith.constant 0.000000e+00 : f32
    %13 = vector.broadcast %cst_11 : f32 to vector<32x32xf32>
    %14 = arith.maximumf %12, %13 : vector<32x32xf32>
    %c0_12 = arith.constant 0 : index
    %c0_13 = arith.constant 0 : index
    %15 = vector.load %arg6[%c0_12, %c0_13] : memref<32x128xf32, #tpu.memory_space<vmem>>, vector<32x128xf32>
    %cst_14 = arith.constant dense<0.000000e+00> : vector<32x128xf32>
    %16 = tpu.matmul %14, %15, %cst_14 {dimension_numbers = #tpu.dot_dimension_numbers<[1], [0], [0], [1], [0, 0, 1, 1], [], []>} : vector<32x32xf32>, vector<32x128xf32>, vector<32x128xf32> -> vector<32x128xf32>
    %c0_15 = arith.constant 0 : index
    %c0_16 = arith.constant 0 : index
    %17 = vector.load %arg7[%c0_15, %c0_16] : memref<1x128xf32, #tpu.memory_space<vmem>>, vector<1x128xf32>
    %18 = vector.broadcast %17 : vector<1x128xf32> to vector<32x128xf32>
    %19 = arith.addf %16, %18 : vector<32x128xf32>
    %20 = tpu.iota {dimensions = array<i32: 1>} : vector<32x128xi32>
    %c8_i32 = arith.constant 8 : i32
    %21 = vector.broadcast %c8_i32 : i32 to vector<32x128xi32>
    %22 = arith.cmpi slt, %20, %21 : vector<32x128xi32>
    %cst_17 = arith.constant 0xFF800000 : f32
    %23 = vector.broadcast %cst_17 : f32 to vector<32x128xf32>
    %24 = arith.select %22, %19, %23 : vector<32x128xi1>, vector<32x128xf32>
    %cst_18 = arith.constant dense<0xFF800000> : vector<32xf32>
    %25 = vector.multi_reduction <maximumf>, %24, %cst_18 [1] : vector<32x128xf32> to vector<32xf32>
    %26 = vector.shape_cast %25 : vector<32xf32> to vector<32x1xf32>
    %27 = vector.broadcast %26 : vector<32x1xf32> to vector<32x128xf32>
    %28 = arith.subf %19, %27 : vector<32x128xf32>
    %cst_19 = arith.constant 0.000000e+00 : f32
    %29 = vector.broadcast %cst_19 : f32 to vector<32x128xf32>
    %30 = arith.minimumf %28, %29 : vector<32x128xf32>
    %31 = math.exp %30 : vector<32x128xf32>
    %cst_20 = arith.constant 0.000000e+00 : f32
    %32 = vector.broadcast %cst_20 : f32 to vector<32x128xf32>
    %33 = arith.select %22, %31, %32 : vector<32x128xi1>, vector<32x128xf32>
    %cst_21 = arith.constant dense<0.000000e+00> : vector<32xf32>
    %34 = vector.multi_reduction <add>, %33, %cst_21 [1] : vector<32x128xf32> to vector<32xf32>
    %35 = vector.shape_cast %34 : vector<32xf32> to vector<32x1xf32>
    %36 = vector.broadcast %35 : vector<32x1xf32> to vector<32x128xf32>
    %37 = arith.divf %33, %36 : vector<32x128xf32>
    %c8_i32_22 = arith.constant 8 : i32
    %38 = vector.broadcast %c8_i32_22 : i32 to vector<32x128xi32>
    %39 = arith.cmpi eq, %20, %38 : vector<32x128xi32>
    %cst_23 = arith.constant 0.000000e+00 : f32
    %40 = vector.broadcast %cst_23 : f32 to vector<32x128xf32>
    %41 = arith.select %39, %19, %40 : vector<32x128xi1>, vector<32x128xf32>
    %42 = arith.addf %37, %41 : vector<32x128xf32>
    %43 = arith.truncf %42 : vector<32x128xf32> to vector<32x128xbf16>
    %c0_24 = arith.constant 0 : index
    %c0_25 = arith.constant 0 : index
    %44 = vector.load %arg8[%c0_24, %c0_25] : memref<32x128xbf16, #tpu.memory_space<vmem>>, vector<32x128xbf16>
    tpu.vector_store %arg8[%c0_24, %c0_25], %43 {strides = array<i32>} : memref<32x128xbf16, #tpu.memory_space<vmem>>, vector<32x128xbf16>,
    return
  }
  func.func @transform_0(%arg0: i32) -> (i32, i32) {
    %c0_i32 = arith.constant 0 : i32
    %c0_i32_0 = arith.constant 0 : i32
    return %arg0, %c0_i32 : i32, i32
  }
  func.func @transform_1(%arg0: i32) -> (i32, i32) {
    %c0_i32 = arith.constant 0 : i32
    %c0_i32_0 = arith.constant 0 : i32
    %c0_i32_1 = arith.constant 0 : i32
    return %c0_i32, %c0_i32_0 : i32, i32
  }
  func.func @transform_2(%arg0: i32) -> (i32, i32) {
    %c0_i32 = arith.constant 0 : i32
    %c0_i32_0 = arith.constant 0 : i32
    %c0_i32_1 = arith.constant 0 : i32
    return %c0_i32, %c0_i32_0 : i32, i32
  }
  func.func @transform_3(%arg0: i32) -> (i32, i32) {
    %c0_i32 = arith.constant 0 : i32
    %c0_i32_0 = arith.constant 0 : i32
    %c0_i32_1 = arith.constant 0 : i32
    return %c0_i32, %c0_i32_0 : i32, i32
  }
  func.func @transform_4(%arg0: i32) -> (i32, i32) {
    %c0_i32 = arith.constant 0 : i32
    %c0_i32_0 = arith.constant 0 : i32
    %c0_i32_1 = arith.constant 0 : i32
    return %c0_i32, %c0_i32_0 : i32, i32
  }
  func.func @transform_5(%arg0: i32) -> (i32, i32) {
    %c0_i32 = arith.constant 0 : i32
    %c0_i32_0 = arith.constant 0 : i32
    %c0_i32_1 = arith.constant 0 : i32
    return %c0_i32, %c0_i32_0 : i32, i32
  }
  func.func @transform_6(%arg0: i32) -> (i32, i32) {
    %c0_i32 = arith.constant 0 : i32
    %c0_i32_0 = arith.constant 0 : i32
    %c0_i32_1 = arith.constant 0 : i32
    return %c0_i32, %c0_i32_0 : i32, i32
  }
  func.func @transform_7(%arg0: i32) -> (i32, i32) {
    %c0_i32 = arith.constant 0 : i32
    %c0_i32_0 = arith.constant 0 : i32
    return %arg0, %c0_i32 : i32, i32
  }
}

</mosaic_0001>

<bundles_post_ra>
// kernel: tpu_custom_call.1
= control target key start
LH: loop header
LB: loop body
LE: loop exit
PB: predicated region body
PF: predicated region fallthrough
CT: control target
= control target key end

     0   :  { %12 = vsyncpa [#allocation3], 0  ;;  %s1255_s0 = inlined_call_operand.vmem [shape: f32[64,16], index: 0, kind: input, shape index: {}]   ;;  %s1256_s1 = inlined_call_operand.vmem [shape: f32[16,32], index: 1, kind: input, shape index: {}]   ;;  %s1257_s2 = inlined_call_operand.vmem [shape: f32[1,32], index: 2, kind: input, shape index: {}]   ;;  %s1258_s3 = inlined_call_operand.vmem [shape: f32[32,32], index: 3, kind: input, shape index: {}]   ;;  %s1259_s4 = inlined_call_operand.vmem [shape: f32[1,32], index: 4, kind: input, shape index: {}]   ;;  %s1260_s5 = inlined_call_operand.vmem [shape: f32[32,128], index: 5, kind: input, shape index: {}]   ;;  %s1261_s6 = inlined_call_operand.vmem [shape: f32[1,128], index: 6, kind: input, shape index: {}]   ;;  %s1262_s7 = inlined_call_operand.hbm [shape: bf16[64,128], index: 7, kind: output, shape index: {}]  }
   0x1   :  { %14 = vsyncpa [#allocation3 + $0x1], 0  ;;  %s1063_s24 = smov 0   ;;  %s1065_s25 = smov 0  }
   0x2   :  { %s1067_s26 = smov 0   ;;  %s1069_s27 = smov 0  }
   0x3 LB: > { %s1084_s28 = sadd.s32 4294967295, %s1018_s27   ;;  %s772_s29 = sadd.s32 4294967294, %s1018_s27   ;;  %s1018_s27 = sphi %s1069_s27, %s1268_s27   ;;  %s1014_s26 = sphi %s1067_s26, %s1267_s26   ;;  %s1010_s25 = sphi %s1065_s25, %s1266_s25   ;;  %s1006_s24 = sphi %s1063_s24, %s1265_s24  }
   0x4   : > { %s1088_s30 = sadd.s32 1, %s1018_s27   ;;  %s179_s8 = sadd.s32 1, %s1014_s26 }
   0x5   : > { %s176_s9 = ssub.s32 %s1018_s27, %s1088_s30  ;;  %p189_p0 = scmp.ne.s32.totalorder %s1014_s26, %s1010_s25 }
   0x6   : > { %p177_p1 = scmp.eq.s32.totalorder %s176_s9, 0  ;;  %p190_p2 = scmp.eq.s32.totalorder %s1084_s28, 1 }
   0x7   : > { %p195_p3 = scmp.ne.s32.totalorder %s1010_s25, %s1006_s24  ;;  %p196_p4 = scmp.eq.s32.totalorder %s772_s29, 1 }
   0x8   : > { %s1099_s10 = scalar_select %p177_p1, %s1014_s26, %s179_s8  }
   0x9   : > { %p1101_p5 = por %p190_p2, %p189_p0  ;;  %p1105_p6 = por %p196_p4, %p195_p3 }
   0xa   : > { %p775_p7 = scmp.ge.s32.totalorder %s1018_s27, 1  ;;  %p241_p8 = scmp.lt.s32.totalorder %s1018_s27, 3 }
   0xc   : > { %p242_p9 = pnand %p775_p7, %p241_p8 }
   0xd   : > { %v284_v0 = vld [vmem:[%s1256_s1] sm:$0xff] (!%p242_p9)  ;;  %v285_v1 = vld [vmem:[%s1256_s1 + $0x8] sm:$0xff] (!%p242_p9)  ;;  %s777_s17 = sshll.u32 (!%p242_p9), %s1084_s28, 2  ;;  %vm293_vm0 = vcmask (!%p242_p9), 130048   ;;  %v397_v10 = vld [vmem:[%s1258_s3 + $0x10] sm:$0xff] (!%p242_p9)  ;;  %vm406_vm1 = vcmask (!%p242_p9), 261120   ;;  %v616_v45 = vlaneseq (!%p242_p9) }
   0xe   : > { %245 = sbr.rel (%p242_p9) target bundleno = 1021 (0x3fd), region = 48  ;;  %v395_v2 = vld [vmem:[%s1258_s3] sm:$0xff] (!%p242_p9)  ;;  %v879_v3 = vpack.c.bf16 (!%p242_p9), %v285_v1, %v284_v0  ;;  %p274_p10 = scmp.lt.s32.totalorder (!%p242_p9), %s777_s17, 7  ;;  %v396_v4 = vld [vmem:[%s1258_s3 + $0x8] sm:$0xff] (!%p242_p9)  ;;  %v398_v11 = vld [vmem:[%s1258_s3 + $0x18] sm:$0xff] (!%p242_p9) }
   0xf   : > { %v883_v5 = vpack.c.bf16 (!%p242_p9), %v396_v4, %v395_v2  ;;  %v887_v12 = vpack.c.bf16 (!%p242_p9), %v398_v11, %v397_v10  ;;  %v508_v13 = vld [vmem:[%s1260_s5] sm:$0xff] (!%p242_p9)  ;;  %v509_v14 = vld [vmem:[%s1260_s5 + $0x8] sm:$0xff] (!%p242_p9)  ;;  %v510_v29 = vld [vmem:[%s1260_s5 + $0x10] sm:$0xff] (!%p242_p9)  ;;  %v1159_v46 = vand.u32 (!%p242_p9), 127, %v616_v45  ;;  %s270_s16 = sand.u32 (!%p242_p9), 1, %s1010_s25   ;;  %s807_s18 = sshll.u32 (!%p242_p9), %s1084_s28, 8 }
  0x10   : > { %880 = vmatprep.subr.bf16.mxu0 (!%p242_p9), %v879_v3  ;;  %v891_v15 = vpack.c.bf16 (!%p242_p9), %v509_v14, %v508_v13  ;;  %v779_v16 = vld [vmem:[%s1257_s2] ss:$0 sm:$0xff] (!%p242_p9)  ;;  %v511_v30 = vld [vmem:[%s1260_s5 + $0x18] sm:$0xff] (!%p242_p9)  ;;  %s1210_s23 = scalar_lea.hbm (!%p242_p9), %s1262_s7, %s807_s18  ;;  %s1214_s28 = scalar_lea.sflag (!%p242_p9), [#allocation3], %s270_s16 }
  0x11   : > { %882 = vmatpush3.bf16.msra.mxu0 (!%p242_p9), %v879_v3  ;;  %884 = vmatprep.subr.bf16.mxu1 (!%p242_p9), %v883_v5  ;;  %v895_v31 = vpack.c.bf16 (!%p242_p9), %v511_v30, %v510_v29  ;;  %v784_v32 = vld [vmem:[%s1259_s4] ss:$0 sm:$0xff] (!%p242_p9)  ;;  %vm618_vm2 = vcmp.lt.s32.totalorder (!%p242_p9), %v1159_v46, 8  ;;  %vm667_vm3 = vcmp.eq.s32.totalorder (!%p242_p9), %v1159_v46, 8 }
  0x12   : > { %886 = vmatpush3.bf16.msra.mxu1 (!%p242_p9), %v883_v5  ;;  %892 = vmatprep.subr.bf16.mxu0 (!%p242_p9), %v891_v15  ;;  %v789_v47 = vld [vmem:[%s1261_s6] ss:$0 sm:$0xff] (!%p242_p9) }
  0x13   : > { %888 = vmatprep.subr.bf16.mxu1 (!%p242_p9), %v887_v12 }
  0x15   : > { %s1270_s17 = smov (!%p274_p10, %s777_s17), 7 }
  0x16   : > { %s778_s22 = sshll.u32 %s1270_s17, 3  ;;  %890 = vmatpush3.bf16.msra.mxu1 %v887_v12  ;;  %s776_s17 = sshll.u32 %s270_s16, 4 }
  0x17   : > { %s277_s8 = scalar_lea.vmem %s1255_s0, %s778_s22  ;;  %s272_s19 = scalar_lea.vmem [#allocation2], %s776_s17 }
  0x18   : > { %v280_v6 = vld [vmem:[%s277_s8] sm:$0xff]  ;;  %v281_v7 = vld [vmem:[%s277_s8 + $0x8] sm:$0xff]  ;;  %v282_v8 = vld [vmem:[%s277_s8 + $0x10] sm:$0xff]  ;;  %s710_s20 = sshll.u32 %s272_s19, 4  ;;  %s1212_s20 = int_to_ptr.vmem [resolvable:$true] %s710_s20 }
  0x19   : > { %845 = vmatprep.mubr.msk.f32.mxu0 %vm293_vm0, %v280_v6  ;;  %v283_v9 = vld [vmem:[%s277_s8 + $0x18] sm:$0xff]  ;;  %s956_s29 = scalar_lea.vmem %s1212_s20, 256  ;;  %s1020_s8 = smov [#allocation2]  }
  0x1a   : > { %846 = vmatmul.mubr.msk.f32.vlgmr.msra.gmra.mrb[0].mxu0 %vm293_vm0, %v281_v7  ;;  %p957_p11 = scmp.ne.s32.totalorder %s1212_s20, %s956_s29  ;;  %s960_s9 = sshll.u32 %s1020_s8, 4  ;;  %s961_s9 = int_to_ptr.vmem [resolvable:$false] %s960_s9 }
  0x1b   : > { %848 = vmatprep.mubr.msk.f32.mxu0 %vm293_vm0, %v282_v8  ;;  %894 = vmatpush3.bf16.msra.mxu0 %v891_v15  ;;  %s962_s13 = scalar_lea.vmem %s961_s9, 512  ;;  %p963_p0 = scmp.lt.s32.totalorder %s1212_s20, %s961_s9 }
  0x1c   : > { %896 = vmatprep.subr.bf16.mxu0 %v895_v31  ;;  %p958_p12 = pnand %p957_p11, %p1101_p5  ;;  %p964_p1 = scmp.lt.s32.totalorder %s962_s13, %s956_s29 }
  0x1e   : > { %849 = vmatmul.mubr.msk.f32.gmra.mrb[2].mxu0 %vm293_vm0, %v283_v9  ;;  %p959_p13 = pneg %p958_p12  ;;  %p965_p2 = por %p964_p1, %p963_p0 }
  0x1f   : > { %898 = vmatpush3.bf16.msra.mxu0 %v895_v31 }
  0x20   : > { %p966_p3 = pnand %p965_p2, %p959_p13 }
  0xed   : > { %v847_v17 = vpop.f32.mrb[0].mxu0 }
  0xee   : > { %v378_v18 = vadd.f32 %v847_v17, %v779_v16  ;;  %v372_v19 = vpop.f32.mrb[1].mxu0 }
  0xef   : > { %v373_v20 = vadd.f32 %v779_v16, %v372_v19 }
  0xf0   : > { %v392_v23 = vmax.f32 %v378_v18, 0.0 }
  0xf1   : > { %v391_v21 = vmax.f32 %v373_v20, 0.0  ;;  %v850_v22 = vpop.f32.mrb[2].mxu0 }
  0xf2   : > { %v388_v24 = vadd.f32 %v850_v22, %v779_v16  ;;  %v382_v25 = vpop.f32.mrb[3].mxu0 }
  0xf3   : > { %v383_v26 = vadd.f32 %v779_v16, %v382_v25  ;;  %859 = vmatprep.mubr.msk.f32.mxu1 %vm406_vm1, %v391_v21 }
  0xf4   : > { %860 = vmatmul.mubr.msk.f32.vlgmr.msra.gmra.mrb[0].mxu1 %vm406_vm1, %v392_v23  ;;  %v394_v28 = vmax.f32 %v388_v24, 0.0 }
  0xf5   : > { %v393_v27 = vmax.f32 %v383_v26, 0.0 }
  0xf7   : > { %862 = vmatprep.mubr.msk.f32.mxu1 %vm406_vm1, %v393_v27 }
  0xf8   : > { %863 = vmatmul.mubr.msk.f32.gmra.mrb[2].mxu1 %vm406_vm1, %v394_v28 }
 0x1c7   : > { %v861_v33 = vpop.f32.mrb[0].mxu1 }
 0x1c8   : > { %v491_v34 = vadd.f32 %v861_v33, %v784_v32  ;;  %v485_v35 = vpop.f32.mrb[1].mxu1 }
 0x1c9   : > { %v486_v36 = vadd.f32 %v784_v32, %v485_v35 }
 0x1ca   : > { %v505_v39 = vmax.f32 %v491_v34, 0.0 }
 0x1cb   : > { %v504_v37 = vmax.f32 %v486_v36, 0.0  ;;  %v864_v38 = vpop.f32.mrb[2].mxu1 }
 0x1cc   : > { %v501_v40 = vadd.f32 %v864_v38, %v784_v32  ;;  %v495_v41 = vpop.f32.mrb[3].mxu1 }
 0x1cd   : > { %v496_v42 = vadd.f32 %v784_v32, %v495_v41  ;;  %873 = vmatprep.mubr.msk.f32.mxu0 %vm406_vm1, %v504_v37 }
 0x1ce   : > { %874 = vmatmul.mubr.msk.f32.vlgmr.msra.gmra.mrb[4].mxu0 %vm406_vm1, %v505_v39  ;;  %v507_v44 = vmax.f32 %v501_v40, 0.0 }
 0x1cf   : > { %v506_v43 = vmax.f32 %v496_v42, 0.0 }
 0x1d1   : > { %876 = vmatprep.mubr.msk.f32.mxu0 %vm406_vm1, %v506_v43 }
 0x1d2   : > { %877 = vmatmul.mubr.msk.f32.gmra.mrb[6].mxu0 %vm406_vm1, %v507_v44 }
 0x2a1   : > { %v875_v48 = vpop.f32.mrb[4].mxu0 }
 0x2a2   : > { %v597_v49 = vpop.f32.mrb[5].mxu0  ;;  %v603_v51 = vadd.f32 %v875_v48, %v789_v47 }
 0x2a3   : > { %v1165_v50 = vadd.f32 %v789_v47, %v597_v49 }
 0x2a4   : > { %v620_v58 = vsel %vm618_vm2, %v603_v51, -inf  ;;  %v669_v29 = vsel %vm667_vm3, %v603_v51, 0.0 }
 0x2a5   : > { %v878_v52 = vpop.f32.mrb[6].mxu0  ;;  %v619_v53 = vsel %vm618_vm2, %v1165_v50, -inf  ;;  %v668_v30 = vsel %vm667_vm3, %v1165_v50, 0.0 }
 0x2a6   : > { %v607_v54 = vpop.f32.mrb[7].mxu0  ;;  %623 = vmax.xlane.f32.xlu0 %v619_v53  ;;  %v1172_v56 = vadd.f32 %v878_v52, %v789_v47 }
 0x2a7   : > { %v1170_v55 = vadd.f32 %v789_v47, %v607_v54 }
 0x2a8   : > { %v622_v59 = vsel %vm618_vm2, %v1172_v56, -inf  ;;  %v671_v37 = vsel %vm667_vm3, %v1172_v56, 0.0 }
 0x2a9   : > { %v621_v57 = vsel %vm618_vm2, %v1170_v55, -inf  ;;  %v670_v38 = vsel %vm667_vm3, %v1170_v55, 0.0 }
 0x2aa   : > { %627 = vmax.xlane.f32.xlu1 %v621_v57  ;;  %625 = vmax.xlane.f32.xlu0 %v620_v58 }
 0x2ae   : > { %629 = vmax.xlane.f32.xlu1 %v622_v59 }
 0x333   : > { %v624_v60 = vpop.xlane.xlu0 %623 }
 0x334   : > { %v631_v61 = vsub.f32 %v1165_v50, %v624_v60 }
 0x336   : > { %v635_v62 = vmin.f32 %v631_v61, 0.0 }
 0x337   : > { %v628_v63 = vpop.xlane.xlu1 %627  ;;  %v626_v0 = vpop.xlane.xlu0 %625 }
 0x338   : > { %v639_v1 = vmul.f32 1.442695, %v635_v62  ;;  %v633_v2 = vsub.f32 %v1170_v55, %v628_v63  ;;  %v632_v3 = vsub.f32 %v603_v51, %v626_v0 }
 0x33a   : > { %940 = vpow2.f32 %v639_v1  ;;  %v637_v4 = vmin.f32 %v633_v2, 0.0  ;;  %v636_v5 = vmin.f32 %v632_v3, 0.0 }
 0x33b   : > { %v630_v6 = vpop.xlane.xlu1 %629 }
 0x33c   : > { %v643_v7 = vmul.f32 1.442695, %v637_v4  ;;  %v641_v8 = vmul.f32 1.442695, %v636_v5  ;;  %v634_v9 = vsub.f32 %v1172_v56, %v630_v6 }
 0x33e   : > { %942 = vpow2.f32 %v643_v7  ;;  %v638_v10 = vmin.f32 %v634_v9, 0.0 }
 0x33f   : > { %944 = vpow2.f32 %v641_v8 }
 0x340   : > { %v645_v11 = vmul.f32 1.442695, %v638_v10 }
 0x342   : > { %946 = vpow2.f32 %v645_v11 }
 0x344   : > { %v941_v12 = vpop.eup %940 }
 0x345   : > { %v647_v13 = vsel %vm618_vm2, %v941_v12, 0.0 }
 0x346   : > { %651 = vadd.xlane.f32.xlu0 %v647_v13 }
 0x348   : > { %v943_v14 = vpop.eup %942 }
 0x349   : > { %v945_v15 = vpop.eup %944  ;;  %v649_v16 = vsel %vm618_vm2, %v943_v14, 0.0 }
 0x34a   : > { %655 = vadd.xlane.f32.xlu0 %v649_v16  ;;  %v648_v17 = vsel %vm618_vm2, %v945_v15, 0.0 }
 0x34b   : > { %653 = vadd.xlane.f32.xlu1 %v648_v17 }
 0x34c   : > { %v947_v18 = vpop.eup %946 }
 0x34d   : > { %v650_v19 = vsel %vm618_vm2, %v947_v18, 0.0 }
 0x34f   : > { %657 = vadd.xlane.f32.xlu1 %v650_v19 }
 0x3d3   : > { %v652_v20 = vpop.xlane.xlu0 %651 }
 0x3d4   : > { %948 = vrcp.f32 %v652_v20 }
 0x3d7   : > { %v656_v21 = vpop.xlane.xlu0 %655 }
 0x3d8   : > { %v654_v22 = vpop.xlane.xlu1 %653  ;;  %950 = vrcp.f32 %v656_v21 }
 0x3d9   : > { %952 = vrcp.f32 %v654_v22 }
 0x3dc   : > { %v658_v23 = vpop.xlane.xlu1 %657 }
 0x3dd   : > { %954 = vrcp.f32 %v658_v23 }
 0x3de   : > { %v949_v24 = vpop.eup %948 }
 0x3df   : > { %v660_v26 = vmul.f32 %v949_v24, %v647_v13 }
 0x3e1   : > { %v672_v31 = vadd.f32 %v668_v30, %v660_v26 }
 0x3e2   : > { %v951_v25 = vpop.eup %950 }
 0x3e3   : > { %v953_v27 = vpop.eup %952  ;;  %v664_v33 = vmul.f32 %v951_v25, %v649_v16 }
 0x3e4   : > { %v662_v28 = vmul.f32 %v953_v27, %v648_v17 }
 0x3e5   : > { %v674_v39 = vadd.f32 %v670_v38, %v664_v33 }
 0x3e6   : > { %v673_v32 = vadd.f32 %v669_v29, %v662_v28 }
 0x3e7   : > { %v955_v34 = vpop.eup %954 }
 0x3e8   : > { %v666_v35 = vmul.f32 %v955_v34, %v650_v19  ;;  %v811_v36 = vpack.c.bf16 %v673_v32, %v672_v31 }
 0x3ea   : > { %v675_v40 = vadd.f32 %v671_v37, %v666_v35  ;;  %812 = vst [vmem:[%s272_s19] sm:$0xff] %v811_v36  }
 0x3ec   : > { %v816_v41 = vpack.c.bf16 %v675_v40, %v674_v39 }
 0x3ee   : > { %818 = vst [vmem:[%s272_s19 + $0x8] sm:$0xff] %v816_v41  }
 0x3ef   : > { %969 = shalt.err (!%p966_p3)
}
 0x3f0   : > { %s970_s14 = scalar_lea.hbm %s1210_s23, 256  ;;  %s974_s17 = scalar_lea.hbm %s1262_s7, 512 }
 0x3f1   : > { %p971_p4 = scmp.ne.s32.totalorder %s1210_s23, %s970_s14  ;;  %p975_p9 = scmp.lt.u32.totalorder %s1210_s23, %s1262_s7 }
 0x3f2   : > { %p976_p10 = scmp.lt.u32.totalorder %s974_s17, %s970_s14  ;;  %p978_p12 = scmp.lt.u32.totalorder %s970_s14, %s1210_s23 }
 0x3f3   : > { %p972_p7 = pnand %p971_p4, %p1101_p5 }
 0x3f4   : > { %p977_p11 = por %p976_p10, %p975_p9 }
 0x3f5   : > { %p973_p8 = pneg %p972_p7 }
 0x3f6   : > { %p979_p13 = por %p978_p12, %p977_p11 }
 0x3f8   : > { %p980_p0 = pnand %p979_p13, %p973_p8 }
 0x3fa   : > { %983 = shalt.err (!%p980_p0)
}
 0x3fb   : > { %s1021_s21 = smov 64   ;;  %s1022_s22 = smov 4  }
 0x3fc   : > { %899 = dma.vmem_to_hbm [thread:$0]  (%p1101_p5), %s1212_s20, 256, %s1210_s23, %s1214_s28, %s1021_s21, %s1021_s21, %s1022_s22  }
 0x3fd PF: > { %p905_p1 = scmp.ge.s32.totalorder %s1018_s27, 2  ;;  %s725_s29 = sand.u32 1, %s1006_s24  }
 0x3fe   : > { %s726_s8 = scalar_lea.sflag [#allocation3], %s725_s29 }
 0x3ff   : > { %p902_p2 = pnand %p905_p1, %p1105_p6 }
 0x401   : > { %1001 = dma.done.wait (!%p902_p2), %s726_s8, 256  }
 0x402   : > { %1003 = vsyncadd (!%p902_p2), %s726_s8, 4294967040  ;;  %p17_p3 = scmp.ge.s32.totalorder %s1088_s30, 4   ;;  %s1265_s24 = smov %s1010_s25 }
 0x403   : > { %s1266_s25 = smov %s1014_s26  ;;  %s1267_s26 = smov %s1099_s10 }
 0x404   : > { %s1268_s27 = smov %s1088_s30  ;;  %19 = sbr.rel (!%p17_p3) target bundleno = 3 (0x3), region = 83 }
 0x40b   :  { %731 = vsyncpa [#allocation3], 1 }
 0x40c   :  { %733 = vsyncpa [#allocation3 + $0x1], 1 }

</bundles_post_ra>
